<compile_context>
chip_gen: v5e
topology: v5e:2x2
jax: 0.10.0
libtpu: 0.0.40
codegen_flags: <defaults>
</compile_context>

<pallas_src>
import jax
import jax.numpy as jnp
from jax.experimental import pallas as pl
from jax.experimental.pallas import tpu as pltpu


def _round_up(x, m):
    return ((x + m - 1) // m) * m


def _make_fused_kernel(channels, prefixes, s_final):
    """Fused Mulcat kernel body.

    refs = (*in_refs, out_ref)
      in_refs[i] : (1, c_i, w_i)  flattened spatial (only the live prefix window)
      out_ref    : (1, C_total, s_final)
    For each input keep the first prefixes[i] flat-spatial elements, zero-pad to
    s_final, stack all bands along the channel axis in registers and store the
    whole block once.  All branching/slicing is static (shapes known at trace time).
    """

    def kernel(*refs):
        in_refs = refs[:-1]
        out_ref = refs[-1]
        bands = []
        for x_ref, c_i, p_i in zip(in_refs, channels, prefixes):
            data = x_ref[0, :, :p_i].astype(out_ref.dtype)   # (c_i, p_i) static slice
            if p_i < s_final:                                  # static branch
                pad = jnp.zeros((c_i, s_final - p_i), dtype=out_ref.dtype)
                band = jnp.concatenate([data, pad], axis=-1)   # (c_i, s_final)
            else:
                band = data                                    # (c_i, s_final)
            bands.append(band)
        # Single full-width store of the whole (C_total, s_final) block.
        out_ref[0] = jnp.concatenate(bands, axis=0)

    return kernel


def mulcat(xs, dimension=1):
    """Pallas implementation of Mulcat.forward for dimension=1 (channel concat)."""
    # TODO(synk): only dimension=1 (channel concat, the PyTorch default) is implemented.
    assert dimension == 1, "only channel-dim concat (d=1) is implemented"
    if len(xs) == 1:
        return xs[0]

    bs = xs[0].shape[0]
    dtype = xs[0].dtype
    for x in xs:
        assert x.ndim == 4 and x.shape[0] == bs and x.dtype == dtype

    channels = [int(x.shape[1]) for x in xs]
    spatials = [int(x.shape[2]) * int(x.shape[3]) for x in xs]
    h_f, w_f = int(xs[-1].shape[2]), int(xs[-1].shape[3])
    s_final = h_f * w_f
    c_total = sum(channels)

    # Live prefix for input i after all later pad/truncate steps:
    #   P_i = min(s_i, s_{i+1}, ..., s_{N-1})
    prefixes = []
    running = s_final
    for s_i in reversed(spatials):
        running = min(running, s_i)
        prefixes.append(running)
    prefixes = prefixes[::-1]

    # Input block lane-width: only DMA the live prefix, rounded up to 128 lanes
    # (or the full flat-spatial extent if that rounding would exceed it, which keeps
    # the (8,128)/full-extent BlockSpec rule satisfied).
    in_widths = []
    for s_i, p_i in zip(spatials, prefixes):
        w_i = _round_up(max(p_i, 1), 128)
        in_widths.append(s_i if w_i >= s_i else w_i)

    xs_flat = [x.reshape(bs, c, s) for x, c, s in zip(xs, channels, spatials)]

    in_specs = [
        pl.BlockSpec((1, c, w), lambda b: (b, 0, 0))
        for c, w in zip(channels, in_widths)
    ]
    out_spec = pl.BlockSpec((1, c_total, s_final), lambda b: (b, 0, 0))

    itemsize = jnp.dtype(dtype).itemsize
    in_block_bytes = sum(c * w for c, w in zip(channels, in_widths)) * itemsize
    out_block_bytes = c_total * s_final * itemsize
    # Double-buffered inputs + output, plus slack; keep it within v7x's 64 MiB VMEM.
    vmem_needed = 2 * (in_block_bytes + out_block_bytes) + (1 << 20)
    vmem_limit = int(min(max(vmem_needed, 16 << 20), 48 << 20))

    cost = pl.CostEstimate(
        flops=0,
        transcendentals=0,
        bytes_accessed=bs * (in_block_bytes + out_block_bytes),
    )

    out_flat = pl.pallas_call(
        _make_fused_kernel(tuple(channels), tuple(prefixes), s_final),
        out_shape=jax.ShapeDtypeStruct((bs, c_total, s_final), dtype),
        grid=(bs,),
        in_specs=in_specs,
        out_specs=out_spec,
        compiler_params=pltpu.CompilerParams(
            dimension_semantics=("parallel",),
            vmem_limit_bytes=vmem_limit,
        ),
        cost_estimate=cost,
    )(*xs_flat)

    return out_flat.reshape(bs, c_total, h_f, w_f)


def mulcat_ref(xs):
    """Pure-JAX reference mirroring the PyTorch forward exactly."""
    x_c = xs[0]
    for x in xs[1:]:
        bs, c, h, w = x.shape
        _, u_c, u_h, u_w = x_c.shape
        f_bias = h * w - u_h * u_w
        flat = x_c.reshape(bs, u_c, -1)
        if f_bias > 0:
            pad = jnp.zeros((bs, u_c, f_bias), dtype=x_c.dtype)
            flat = jnp.concatenate([flat, pad], axis=-1)
        elif f_bias < 0:
            flat = flat[:, :, : h * w]
        x_c = jnp.concatenate([flat.reshape(bs, u_c, h, w), x], axis=1)
    return x_c


if __name__ == "__main__":
    key = jax.random.PRNGKey(0)
    k0, k1, k2 = jax.random.split(key, 3)

    # Small NCHW inputs chosen to exercise both the zero-pad (spatial grows)
    # and the truncate (spatial shrinks) branches of the forward pass.
    x0 = jax.random.normal(k0, (2, 4, 8, 8), dtype=jnp.float32)     # accumulator start
    x1 = jax.random.normal(k1, (2, 3, 16, 16), dtype=jnp.float32)   # larger spatial -> pad
    x2 = jax.random.normal(k2, (2, 2, 4, 4), dtype=jnp.float32)     # smaller spatial -> truncate
    xs = [x0, x1, x2]

    out = jax.block_until_ready(mulcat(xs))
    ref = mulcat_ref(xs)

    assert out.shape == ref.shape == (2, 9, 4, 4), (out.shape, ref.shape)
    assert jnp.allclose(out, ref), "Pallas output mismatch vs reference"

    print("KERNEL_OK")
</pallas_src>

<mosaic_0001>
module attributes {stable_mosaic.version = 11 : i64} {
  func.func @kernel(%arg0: i32, %arg1: memref<1x4x64xf32, #tpu.memory_space<vmem>>, %arg2: memref<1x3x128xf32, #tpu.memory_space<vmem>>, %arg3: memref<1x2x16xf32, #tpu.memory_space<vmem>>, %arg4: memref<1x9x16xf32, #tpu.memory_space<vmem>>) attributes {dimension_semantics = [#tpu.dimension_semantics<parallel>], iteration_bounds = array<i64: 2>, scalar_prefetch = 0 : i64, scratch_operands = 0 : i64, tpu.core_type = #tpu.core_type<tc>, window_params = [{transform_indices = @transform_0, window_bounds = array<i64: 1, 4, 64>}, {transform_indices = @transform_1, window_bounds = array<i64: 1, 3, 128>}, {transform_indices = @transform_2, window_bounds = array<i64: 1, 2, 16>}, {transform_indices = @transform_3, window_bounds = array<i64: 1, 9, 16>}]} {
    %c0 = arith.constant 0 : index
    %c0_0 = arith.constant 0 : index
    %c0_1 = arith.constant 0 : index
    %0 = vector.load %arg1[%c0, %c0_0, %c0_1] : memref<1x4x64xf32, #tpu.memory_space<vmem>>, vector<1x4x16xf32>
    %1 = vector.shape_cast %0 : vector<1x4x16xf32> to vector<4x16xf32>
    %c0_2 = arith.constant 0 : index
    %c0_3 = arith.constant 0 : index
    %c0_4 = arith.constant 0 : index
    %2 = vector.load %arg2[%c0_2, %c0_3, %c0_4] : memref<1x3x128xf32, #tpu.memory_space<vmem>>, vector<1x3x16xf32>
    %3 = vector.shape_cast %2 : vector<1x3x16xf32> to vector<3x16xf32>
    %c0_5 = arith.constant 0 : index
    %c0_6 = arith.constant 0 : index
    %c0_7 = arith.constant 0 : index
    %4 = vector.load %arg3[%c0_5, %c0_6, %c0_7] : memref<1x2x16xf32, #tpu.memory_space<vmem>>, vector<1x2x16xf32>
    %5 = vector.shape_cast %4 : vector<1x2x16xf32> to vector<2x16xf32>
    %6 = tpu.concatenate %1, %3, %5 in 0 : vector<4x16xf32>, vector<3x16xf32>, vector<2x16xf32> -> vector<9x16xf32>
    %c0_8 = arith.constant 0 : index
    %c0_9 = arith.constant 0 : index
    %c0_10 = arith.constant 0 : index
    %7 = vector.load %arg4[%c0_8, %c0_9, %c0_10] : memref<1x9x16xf32, #tpu.memory_space<vmem>>, vector<1x9x16xf32>
    %8 = vector.shape_cast %7 : vector<1x9x16xf32> to vector<9x16xf32>
    %9 = vector.shape_cast %6 : vector<9x16xf32> to vector<1x9x16xf32>
    tpu.vector_store %arg4[%c0_8, %c0_9, %c0_10], %9 {strides = array<i32>} : memref<1x9x16xf32, #tpu.memory_space<vmem>>, vector<1x9x16xf32>,
    return
  }
  func.func @transform_0(%arg0: i32) -> (i32, i32, i32) {
    %c0_i32 = arith.constant 0 : i32
    %c0_i32_0 = arith.constant 0 : i32
    %c0_i32_1 = arith.constant 0 : i32
    return %arg0, %c0_i32, %c0_i32_0 : i32, i32, i32
  }
  func.func @transform_1(%arg0: i32) -> (i32, i32, i32) {
    %c0_i32 = arith.constant 0 : i32
    %c0_i32_0 = arith.constant 0 : i32
    %c0_i32_1 = arith.constant 0 : i32
    return %arg0, %c0_i32, %c0_i32_0 : i32, i32, i32
  }
  func.func @transform_2(%arg0: i32) -> (i32, i32, i32) {
    %c0_i32 = arith.constant 0 : i32
    %c0_i32_0 = arith.constant 0 : i32
    %c0_i32_1 = arith.constant 0 : i32
    return %arg0, %c0_i32, %c0_i32_0 : i32, i32, i32
  }
  func.func @transform_3(%arg0: i32) -> (i32, i32, i32) {
    %c0_i32 = arith.constant 0 : i32
    %c0_i32_0 = arith.constant 0 : i32
    %c0_i32_1 = arith.constant 0 : i32
    return %arg0, %c0_i32, %c0_i32_0 : i32, i32, i32
  }
}

</mosaic_0001>

<bundles_post_ra>
// kernel: tpu_custom_call.1
= control target key start
LH: loop header
LB: loop body
LE: loop exit
PB: predicated region body
PF: predicated region fallthrough
CT: control target
= control target key end

     0   :  { %s352_s12 = smov 0   ;;  %s375_s0 = inlined_call_operand.vmem [shape: f32[2,4,64], index: 0, kind: input, shape index: {}]   ;;  %s376_s1 = inlined_call_operand.vmem [shape: f32[2,3,256], index: 1, kind: input, shape index: {}]   ;;  %s377_s2 = inlined_call_operand.vmem [shape: f32[2,2,16], index: 2, kind: input, shape index: {}]   ;;  %s378_s3 = inlined_call_operand.vmem [shape: f32[2,9,16], index: 3, kind: output, shape index: {}]  }
   0x1 LB: > { %s301_s13 = sadd.s32 4294967295, %s330_s12   ;;  %p305_p0 = scmp.ge.s32.totalorder %s330_s12, 1  ;;  %s330_s12 = sphi %s352_s12, %s13_s12  }
   0x2   : > { %p155_p1 = scmp.lt.s32.totalorder %s330_s12, 3 }
   0x4   : > { %p156_p2 = pnand %p305_p0, %p155_p1 }
   0x5   : > { %p187_p3 = scmp.lt.s32.totalorder (!%p156_p2), %s301_s13, 1 }
   0x6   : > { %159 = sbr.rel (%p156_p2) target bundleno = 21 (0x15), region = 32 }
   0xb   : > { %s380_s13 = smov (!%p187_p3, %s301_s13), 1  ;;  %vm214_vm0 = vcmask 1043456   ;;  %vm216_vm1 = vcmask 1046528   ;;  %vm220_vm2 = vcmask 122880   ;;  %vm218_vm3 = vcmask 130048  }
   0xc   : > { %s306_s14 = sshll.u32 %s380_s13, 2  ;;  %s314_s15 = sshll.u32 %s380_s13, 3 }
   0xd   : > { %s190_s18 = scalar_lea.vmem %s375_s0, %s306_s14  ;;  %s195_s21 = scalar_lea.vmem %s376_s1, %s314_s15 }
   0xe   : > { %s309_s22 = sshll.u32 %s380_s13, 1  ;;  %s315_s23 = sshll.u32 %s380_s13, 4  ;;  %v205_v0 = vld [vmem:[%s190_s18] sm:$0xf] }
   0xf   : > { %v206_v1 = vld [vmem:[%s195_s21] sm:$0x7]  ;;  %s199_s26 = scalar_lea.vmem %s377_s2, %s309_s22  ;;  %s204_s29 = scalar_lea.vmem %s378_s3, %s315_s23 }
  0x10   : > { %v209_v2 = vrot.slane %v206_v1, 4  ;;  %v207_v3 = vld [vmem:[%s199_s26] sm:$0x3] }
  0x11   : > { %v212_v4 = vrot.slane %v207_v3, 1 }
  0x12   : > { %v215_v5 = vsel %vm214_vm0, %v205_v0, %v209_v2 }
  0x13   : > { %v217_v6 = vsel %vm216_vm1, %v215_v5, %v212_v4  ;;  %221 = vst.msk [vmem:[%s204_s29 + $0x8] sm:$0x1] %vm220_vm2, %v212_v4 }
  0x14   : > { %219 = vst.msk [vmem:[%s204_s29] sm:$0xff] %vm218_vm3, %v217_v6 }
  0x15 PF: > { %s13_s12 = sadd.s32 1, %s330_s12  }
  0x16   : > { %p10_p4 = scmp.ge.s32.totalorder %s13_s12, 4  }
  0x18   :  { %12 = sbr.rel (!%p10_p4) target bundleno = 1 (0x1), region = 68 }

</bundles_post_ra>
